<compile_context>
chip_gen: v5e
topology: v5e:2x2
jax: 0.10.0
libtpu: 0.0.40
codegen_flags: <defaults>
</compile_context>

<pallas_src>
import jax
import jax.numpy as jnp
from jax.experimental import pallas as pl
from jax.experimental.pallas import tpu as pltpu

NEG_SLOPE = 0.01  # nn.LeakyReLU() default negative_slope


def _round_up(n: int, m: int) -> int:
    return ((n + m - 1) // m) * m


def _mlp_kernel(x_ref, *refs):
    """Fused forward: h = x; for each layer: h = leaky_relu(h @ W + b).

    refs = (w0, b0, w1, b1, ..., w_{L-1}, b_{L-1}, o_ref)
    x/W are bf16 (lane-padded), biases f32, accumulation f32 on the MXU.
    Intermediate activations live only in vregs/VMEM (never touch HBM).
    """
    o_ref = refs[-1]
    wb = refs[:-1]
    n_layers = len(wb) // 2

    h = x_ref[...]                               # (TB, Din_pad) bf16
    for layer in range(n_layers):
        w = wb[2 * layer][...]                   # (Din_pad, Dout_pad) bf16
        b = wb[2 * layer + 1][...]               # (1, Dout_pad) f32
        y = jnp.dot(h, w, preferred_element_type=jnp.float32) + b
        y = jnp.where(y >= 0.0, y, NEG_SLOPE * y)   # LeakyReLU in f32 (v5e-safe)
        if layer < n_layers - 1:
            h = y.astype(jnp.bfloat16)           # feed next MXU matmul in bf16
        else:
            h = y                                # keep final activation f32
    o_ref[...] = h.astype(o_ref.dtype)


def init_mlp_params(key, input_dim, out_dim, hidden_dims=(64, 64)):
    """Deterministic init matching nn.Linear shapes (weights stored transposed)."""
    in_dims = [input_dim] + list(hidden_dims)
    out_dims = list(hidden_dims) + [out_dim]
    params = []
    for _in, _out in zip(in_dims, out_dims):
        key, kw, kb = jax.random.split(key, 3)
        bound = 1.0 / jnp.sqrt(float(_in))  # PyTorch nn.Linear uniform bound
        w = jax.random.uniform(kw, (_in, _out), jnp.float32, -bound, bound)
        b = jax.random.uniform(kb, (_out,), jnp.float32, -bound, bound)
        params.append((w, b))
    return params


def _pad_params(params):
    """Zero-pad every layer's (W, b) to lane-dense (multiple-of-128) feature dims.

    Zero padding is exact: padded weight rows/cols and bias entries are 0, so
    padded activation columns stay exactly 0 through LeakyReLU and never
    contribute to later layers.
    """
    padded = []
    for w, b in params:
        din, dout = w.shape
        dip, dop = _round_up(din, 128), _round_up(dout, 128)
        wp = jnp.zeros((dip, dop), jnp.bfloat16).at[:din, :dout].set(
            w.astype(jnp.bfloat16))
        bp = jnp.zeros((1, dop), jnp.float32).at[0, :dout].set(b)
        padded.append((wp, bp))
    return padded


def _build_in_specs(TB, Din_pad, padded_params, single_buffer_weights):
    specs = [pl.BlockSpec((TB, Din_pad), lambda i: (i, 0))]
    for wp, bp in padded_params:
        if single_buffer_weights:
            # Constant index_map -> block never re-DMAs; a single buffer is
            # enough, so don't waste VMEM on the default double buffer.
            specs.append(pl.BlockSpec(wp.shape, lambda i: (0, 0),
                                      pipeline_mode=pl.Buffered(1)))
            specs.append(pl.BlockSpec(bp.shape, lambda i: (0, 0),
                                      pipeline_mode=pl.Buffered(1)))
        else:
            specs.append(pl.BlockSpec(wp.shape, lambda i: (0, 0)))
            specs.append(pl.BlockSpec(bp.shape, lambda i: (0, 0)))
    return specs


def mlp_forward(x, params, *, batch_tile=1024, out_dtype=jnp.float32):
    """Fused MLP forward. x: (B, Din) -> (B, Dout) in `out_dtype`."""
    B, Din = x.shape
    Dout = params[-1][0].shape[1]
    Din_pad = _round_up(Din, 128)
    Dout_pad = _round_up(Dout, 128)

    # Batch tiling: small batches round up to 16 rows (bf16 sublane packing);
    # large batches use batch_tile (default 1024, a multiple of 256 -> full MXU
    # M dim on v6e/v7x and big enough to hit the HBM roofline).
    if B <= batch_tile:
        TB = _round_up(B, 16)
    else:
        TB = batch_tile
    B_pad = _round_up(B, TB)

    # bf16 input end-to-end; skip the materialized pad pass when already aligned.
    x_bf16 = x.astype(jnp.bfloat16)
    if B_pad == B and Din_pad == Din:
        x_pad = x_bf16
    else:
        x_pad = jnp.pad(x_bf16, ((0, B_pad - B), (0, Din_pad - Din)))

    padded_params = _pad_params(params)
    flat_args = []
    for wp, bp in padded_params:
        flat_args.append(wp)
        flat_args.append(bp)

    # Explicit VMEM budget: 2 x-buffers + 2 out-buffers + (conservatively
    # double-buffered) resident weights, with 2x margin, clamped to 64 MiB so
    # it stays below v7x's physical VMEM while still >= every default.
    out_bytes = jnp.dtype(out_dtype).itemsize
    wt_bytes = sum(int(wp.size) * wp.dtype.itemsize + int(bp.size) * bp.dtype.itemsize
                   for wp, bp in padded_params)
    act_bytes = 2 * TB * Din_pad * 2 + 2 * TB * Dout_pad * out_bytes
    est = act_bytes + 2 * wt_bytes
    vmem_limit = int(min(max(32 << 20, 2 * est), 64 << 20))

    # TODO(synk): for very large hidden dims (resident weights > ~1/2 scoped
    # VMEM, i.e. hidden ~2-2.5K on v7x's 64 MiB), grid the output-feature dim of
    # the big layers / pltpu.emit_pipeline over K instead of fully-resident W.
    # TODO(synk): verify the batch grid axis actually shards across v7x's 2
    # TensorCores; if not, switch to pltpu.CORE_PARALLEL / explicit core_map.
    compiler_params = pltpu.CompilerParams(
        dimension_semantics=("parallel",),
        vmem_limit_bytes=vmem_limit,
    )
    out_shape = jax.ShapeDtypeStruct((B_pad, Dout_pad), out_dtype)
    out_specs = pl.BlockSpec((TB, Dout_pad), lambda i: (i, 0))
    grid = (B_pad // TB,)

    def _call(single_buffer_weights):
        in_specs = _build_in_specs(TB, Din_pad, padded_params, single_buffer_weights)
        return pl.pallas_call(
            _mlp_kernel,
            out_shape=out_shape,
            grid=grid,
            in_specs=in_specs,
            out_specs=out_specs,
            compiler_params=compiler_params,
        )(x_pad, *flat_args)

    try:
        out_pad = _call(single_buffer_weights=True)
    except Exception:
        # Fallback if single-buffered (pipeline_mode=pl.Buffered(1)) resident
        # blocks are not supported by this JAX/Mosaic version.
        out_pad = _call(single_buffer_weights=False)

    if B_pad == B and Dout_pad == Dout:
        return out_pad
    return out_pad[:B, :Dout]


def mlp_reference(x, params):
    """Pure-JAX reference (PyTorch semantics: LeakyReLU after every Linear)."""
    h = x
    for w, b in params:
        y = h @ w + b
        h = jnp.where(y >= 0.0, y, NEG_SLOPE * y)
    return h


if __name__ == "__main__":
    key = jax.random.PRNGKey(0)
    batch, input_dim, out_dim = 8, 32, 16
    hidden_dims = (64, 64)

    kx, kp = jax.random.split(key)
    x = jax.random.normal(kx, (batch, input_dim), jnp.float32)
    params = init_mlp_params(kp, input_dim, out_dim, hidden_dims)

    out = mlp_forward(x, params)
    out = jax.block_until_ready(out)

    ref = mlp_reference(x, params)
    assert out.shape == (batch, out_dim)
    # bf16 MXU inputs with f32 accumulation -> loose-ish tolerance vs f32 ref.
    assert jnp.allclose(out, ref, atol=5e-2, rtol=5e-2)

    print("KERNEL_OK")
</pallas_src>

<mosaic_0001>
module attributes {stable_mosaic.version = 11 : i64} {
  func.func @_mlp_kernel(%arg0: i32, %arg1: memref<16x128xbf16, #tpu.memory_space<vmem>>, %arg2: memref<128x128xbf16, #tpu.memory_space<vmem>>, %arg3: memref<1x128xf32, #tpu.memory_space<vmem>>, %arg4: memref<128x128xbf16, #tpu.memory_space<vmem>>, %arg5: memref<1x128xf32, #tpu.memory_space<vmem>>, %arg6: memref<128x128xbf16, #tpu.memory_space<vmem>>, %arg7: memref<1x128xf32, #tpu.memory_space<vmem>>, %arg8: memref<16x128xf32, #tpu.memory_space<vmem>>) attributes {dimension_semantics = [#tpu.dimension_semantics<parallel>], iteration_bounds = array<i64: 1>, scalar_prefetch = 0 : i64, scratch_operands = 0 : i64, tpu.core_type = #tpu.core_type<tc>, window_params = [{transform_indices = @transform_0, window_bounds = array<i64: 16, 128>}, {pipeline_mode = #tpu.pipeline_mode<synchronous>, transform_indices = @transform_1, window_bounds = array<i64: 128, 128>}, {pipeline_mode = #tpu.pipeline_mode<synchronous>, transform_indices = @transform_2, window_bounds = array<i64: 1, 128>}, {pipeline_mode = #tpu.pipeline_mode<synchronous>, transform_indices = @transform_3, window_bounds = array<i64: 128, 128>}, {pipeline_mode = #tpu.pipeline_mode<synchronous>, transform_indices = @transform_4, window_bounds = array<i64: 1, 128>}, {pipeline_mode = #tpu.pipeline_mode<synchronous>, transform_indices = @transform_5, window_bounds = array<i64: 128, 128>}, {pipeline_mode = #tpu.pipeline_mode<synchronous>, transform_indices = @transform_6, window_bounds = array<i64: 1, 128>}, {transform_indices = @transform_7, window_bounds = array<i64: 16, 128>}]} {
    %c0 = arith.constant 0 : index
    %c0_0 = arith.constant 0 : index
    %0 = vector.load %arg1[%c0, %c0_0] : memref<16x128xbf16, #tpu.memory_space<vmem>>, vector<16x128xbf16>
    %c0_1 = arith.constant 0 : index
    %c0_2 = arith.constant 0 : index
    %1 = vector.load %arg2[%c0_1, %c0_2] : memref<128x128xbf16, #tpu.memory_space<vmem>>, vector<128x128xbf16>
    %c0_3 = arith.constant 0 : index
    %c0_4 = arith.constant 0 : index
    %2 = vector.load %arg3[%c0_3, %c0_4] : memref<1x128xf32, #tpu.memory_space<vmem>>, vector<1x128xf32>
    %cst = arith.constant dense<0.000000e+00> : vector<16x128xf32>
    %3 = tpu.matmul %0, %1, %cst {dimension_numbers = #tpu.dot_dimension_numbers<[1], [0], [0], [1], [0, 0, 1, 1], [], []>} : vector<16x128xbf16>, vector<128x128xbf16>, vector<16x128xf32> -> vector<16x128xf32>
    %4 = vector.broadcast %2 : vector<1x128xf32> to vector<16x128xf32>
    %5 = arith.addf %3, %4 : vector<16x128xf32>
    %cst_5 = arith.constant 0.000000e+00 : f32
    %6 = vector.broadcast %cst_5 : f32 to vector<16x128xf32>
    %7 = arith.cmpf oge, %5, %6 : vector<16x128xf32>
    %cst_6 = arith.constant 0.00999999977 : f32
    %8 = vector.broadcast %cst_6 : f32 to vector<16x128xf32>
    %9 = arith.mulf %8, %5 : vector<16x128xf32>
    %10 = arith.select %7, %5, %9 : vector<16x128xi1>, vector<16x128xf32>
    %11 = arith.truncf %10 : vector<16x128xf32> to vector<16x128xbf16>
    %c0_7 = arith.constant 0 : index
    %c0_8 = arith.constant 0 : index
    %12 = vector.load %arg4[%c0_7, %c0_8] : memref<128x128xbf16, #tpu.memory_space<vmem>>, vector<128x128xbf16>
    %c0_9 = arith.constant 0 : index
    %c0_10 = arith.constant 0 : index
    %13 = vector.load %arg5[%c0_9, %c0_10] : memref<1x128xf32, #tpu.memory_space<vmem>>, vector<1x128xf32>
    %cst_11 = arith.constant dense<0.000000e+00> : vector<16x128xf32>
    %14 = tpu.matmul %11, %12, %cst_11 {dimension_numbers = #tpu.dot_dimension_numbers<[1], [0], [0], [1], [0, 0, 1, 1], [], []>} : vector<16x128xbf16>, vector<128x128xbf16>, vector<16x128xf32> -> vector<16x128xf32>
    %15 = vector.broadcast %13 : vector<1x128xf32> to vector<16x128xf32>
    %16 = arith.addf %14, %15 : vector<16x128xf32>
    %cst_12 = arith.constant 0.000000e+00 : f32
    %17 = vector.broadcast %cst_12 : f32 to vector<16x128xf32>
    %18 = arith.cmpf oge, %16, %17 : vector<16x128xf32>
    %cst_13 = arith.constant 0.00999999977 : f32
    %19 = vector.broadcast %cst_13 : f32 to vector<16x128xf32>
    %20 = arith.mulf %19, %16 : vector<16x128xf32>
    %21 = arith.select %18, %16, %20 : vector<16x128xi1>, vector<16x128xf32>
    %22 = arith.truncf %21 : vector<16x128xf32> to vector<16x128xbf16>
    %c0_14 = arith.constant 0 : index
    %c0_15 = arith.constant 0 : index
    %23 = vector.load %arg6[%c0_14, %c0_15] : memref<128x128xbf16, #tpu.memory_space<vmem>>, vector<128x128xbf16>
    %c0_16 = arith.constant 0 : index
    %c0_17 = arith.constant 0 : index
    %24 = vector.load %arg7[%c0_16, %c0_17] : memref<1x128xf32, #tpu.memory_space<vmem>>, vector<1x128xf32>
    %cst_18 = arith.constant dense<0.000000e+00> : vector<16x128xf32>
    %25 = tpu.matmul %22, %23, %cst_18 {dimension_numbers = #tpu.dot_dimension_numbers<[1], [0], [0], [1], [0, 0, 1, 1], [], []>} : vector<16x128xbf16>, vector<128x128xbf16>, vector<16x128xf32> -> vector<16x128xf32>
    %26 = vector.broadcast %24 : vector<1x128xf32> to vector<16x128xf32>
    %27 = arith.addf %25, %26 : vector<16x128xf32>
    %cst_19 = arith.constant 0.000000e+00 : f32
    %28 = vector.broadcast %cst_19 : f32 to vector<16x128xf32>
    %29 = arith.cmpf oge, %27, %28 : vector<16x128xf32>
    %cst_20 = arith.constant 0.00999999977 : f32
    %30 = vector.broadcast %cst_20 : f32 to vector<16x128xf32>
    %31 = arith.mulf %30, %27 : vector<16x128xf32>
    %32 = arith.select %29, %27, %31 : vector<16x128xi1>, vector<16x128xf32>
    %c0_21 = arith.constant 0 : index
    %c0_22 = arith.constant 0 : index
    %33 = vector.load %arg8[%c0_21, %c0_22] : memref<16x128xf32, #tpu.memory_space<vmem>>, vector<16x128xf32>
    tpu.vector_store %arg8[%c0_21, %c0_22], %32 {strides = array<i32>} : memref<16x128xf32, #tpu.memory_space<vmem>>, vector<16x128xf32>,
    return
  }
  func.func @transform_0(%arg0: i32) -> (i32, i32) {
    %c0_i32 = arith.constant 0 : i32
    %c0_i32_0 = arith.constant 0 : i32
    return %arg0, %c0_i32 : i32, i32
  }
  func.func @transform_1(%arg0: i32) -> (i32, i32) {
    %c0_i32 = arith.constant 0 : i32
    %c0_i32_0 = arith.constant 0 : i32
    %c0_i32_1 = arith.constant 0 : i32
    return %c0_i32, %c0_i32_0 : i32, i32
  }
  func.func @transform_2(%arg0: i32) -> (i32, i32) {
    %c0_i32 = arith.constant 0 : i32
    %c0_i32_0 = arith.constant 0 : i32
    %c0_i32_1 = arith.constant 0 : i32
    return %c0_i32, %c0_i32_0 : i32, i32
  }
  func.func @transform_3(%arg0: i32) -> (i32, i32) {
    %c0_i32 = arith.constant 0 : i32
    %c0_i32_0 = arith.constant 0 : i32
    %c0_i32_1 = arith.constant 0 : i32
    return %c0_i32, %c0_i32_0 : i32, i32
  }
  func.func @transform_4(%arg0: i32) -> (i32, i32) {
    %c0_i32 = arith.constant 0 : i32
    %c0_i32_0 = arith.constant 0 : i32
    %c0_i32_1 = arith.constant 0 : i32
    return %c0_i32, %c0_i32_0 : i32, i32
  }
  func.func @transform_5(%arg0: i32) -> (i32, i32) {
    %c0_i32 = arith.constant 0 : i32
    %c0_i32_0 = arith.constant 0 : i32
    %c0_i32_1 = arith.constant 0 : i32
    return %c0_i32, %c0_i32_0 : i32, i32
  }
  func.func @transform_6(%arg0: i32) -> (i32, i32) {
    %c0_i32 = arith.constant 0 : i32
    %c0_i32_0 = arith.constant 0 : i32
    %c0_i32_1 = arith.constant 0 : i32
    return %c0_i32, %c0_i32_0 : i32, i32
  }
  func.func @transform_7(%arg0: i32) -> (i32, i32) {
    %c0_i32 = arith.constant 0 : i32
    %c0_i32_0 = arith.constant 0 : i32
    return %arg0, %c0_i32 : i32, i32
  }
}

module attributes {stable_mosaic.version = 11 : i64} {
  func.func @_mlp_kernel(%arg0: i32, %arg1: memref<16x128xbf16, #tpu.memory_space<vmem>>, %arg2: memref<128x128xbf16, #tpu.memory_space<vmem>>, %arg3: memref<1x128xf32, #tpu.memory_space<vmem>>, %arg4: memref<128x128xbf16, #tpu.memory_space<vmem>>, %arg5: memref<1x128xf32, #tpu.memory_space<vmem>>, %arg6: memref<128x128xbf16, #tpu.memory_space<vmem>>, %arg7: memref<1x128xf32, #tpu.memory_space<vmem>>, %arg8: memref<16x128xf32, #tpu.memory_space<vmem>>) attributes {dimension_semantics = [#tpu.dimension_semantics<parallel>], iteration_bounds = array<i64: 1>, scalar_prefetch = 0 : i64, scratch_operands = 0 : i64, tpu.core_type = #tpu.core_type<tc>, window_params = [{transform_indices = @transform_0, window_bounds = array<i64: 16, 128>}, {pipeline_mode = #tpu.pipeline_mode<synchronous>, transform_indices = @transform_1, window_bounds = array<i64: 128, 128>}, {pipeline_mode = #tpu.pipeline_mode<synchronous>, transform_indices = @transform_2, window_bounds = array<i64: 1, 128>}, {pipeline_mode = #tpu.pipeline_mode<synchronous>, transform_indices = @transform_3, window_bounds = array<i64: 128, 128>}, {pipeline_mode = #tpu.pipeline_mode<synchronous>, transform_indices = @transform_4, window_bounds = array<i64: 1, 128>}, {pipeline_mode = #tpu.pipeline_mode<synchronous>, transform_indices = @transform_5, window_bounds = array<i64: 128, 128>}, {pipeline_mode = #tpu.pipeline_mode<synchronous>, transform_indices = @transform_6, window_bounds = array<i64: 1, 128>}, {transform_indices = @transform_7, window_bounds = array<i64: 16, 128>}]} {
    %c0 = arith.constant 0 : index
    %c0_0 = arith.constant 0 : index
    %0 = vector.load %arg1[%c0, %c0_0] : memref<16x128xbf16, #tpu.memory_space<vmem>>, vector<16x128xbf16>
    %c0_1 = arith.constant 0 : index
    %c0_2 = arith.constant 0 : index
    %1 = vector.load %arg2[%c0_1, %c0_2] : memref<128x128xbf16, #tpu.memory_space<vmem>>, vector<128x128xbf16>
    %c0_3 = arith.constant 0 : index
    %c0_4 = arith.constant 0 : index
    %2 = vector.load %arg3[%c0_3, %c0_4] : memref<1x128xf32, #tpu.memory_space<vmem>>, vector<1x128xf32>
    %cst = arith.constant dense<0.000000e+00> : vector<16x128xf32>
    %3 = tpu.matmul %0, %1, %cst {dimension_numbers = #tpu.dot_dimension_numbers<[1], [0], [0], [1], [0, 0, 1, 1], [], []>} : vector<16x128xbf16>, vector<128x128xbf16>, vector<16x128xf32> -> vector<16x128xf32>
    %4 = vector.broadcast %2 : vector<1x128xf32> to vector<16x128xf32>
    %5 = arith.addf %3, %4 : vector<16x128xf32>
    %cst_5 = arith.constant 0.000000e+00 : f32
    %6 = vector.broadcast %cst_5 : f32 to vector<16x128xf32>
    %7 = arith.cmpf oge, %5, %6 : vector<16x128xf32>
    %cst_6 = arith.constant 0.00999999977 : f32
    %8 = vector.broadcast %cst_6 : f32 to vector<16x128xf32>
    %9 = arith.mulf %8, %5 : vector<16x128xf32>
    %10 = arith.select %7, %5, %9 : vector<16x128xi1>, vector<16x128xf32>
    %11 = arith.truncf %10 : vector<16x128xf32> to vector<16x128xbf16>
    %c0_7 = arith.constant 0 : index
    %c0_8 = arith.constant 0 : index
    %12 = vector.load %arg4[%c0_7, %c0_8] : memref<128x128xbf16, #tpu.memory_space<vmem>>, vector<128x128xbf16>
    %c0_9 = arith.constant 0 : index
    %c0_10 = arith.constant 0 : index
    %13 = vector.load %arg5[%c0_9, %c0_10] : memref<1x128xf32, #tpu.memory_space<vmem>>, vector<1x128xf32>
    %cst_11 = arith.constant dense<0.000000e+00> : vector<16x128xf32>
    %14 = tpu.matmul %11, %12, %cst_11 {dimension_numbers = #tpu.dot_dimension_numbers<[1], [0], [0], [1], [0, 0, 1, 1], [], []>} : vector<16x128xbf16>, vector<128x128xbf16>, vector<16x128xf32> -> vector<16x128xf32>
    %15 = vector.broadcast %13 : vector<1x128xf32> to vector<16x128xf32>
    %16 = arith.addf %14, %15 : vector<16x128xf32>
    %cst_12 = arith.constant 0.000000e+00 : f32
    %17 = vector.broadcast %cst_12 : f32 to vector<16x128xf32>
    %18 = arith.cmpf oge, %16, %17 : vector<16x128xf32>
    %cst_13 = arith.constant 0.00999999977 : f32
    %19 = vector.broadcast %cst_13 : f32 to vector<16x128xf32>
    %20 = arith.mulf %19, %16 : vector<16x128xf32>
    %21 = arith.select %18, %16, %20 : vector<16x128xi1>, vector<16x128xf32>
    %22 = arith.truncf %21 : vector<16x128xf32> to vector<16x128xbf16>
    %c0_14 = arith.constant 0 : index
    %c0_15 = arith.constant 0 : index
    %23 = vector.load %arg6[%c0_14, %c0_15] : memref<128x128xbf16, #tpu.memory_space<vmem>>, vector<128x128xbf16>
    %c0_16 = arith.constant 0 : index
    %c0_17 = arith.constant 0 : index
    %24 = vector.load %arg7[%c0_16, %c0_17] : memref<1x128xf32, #tpu.memory_space<vmem>>, vector<1x128xf32>
    %cst_18 = arith.constant dense<0.000000e+00> : vector<16x128xf32>
    %25 = tpu.matmul %22, %23, %cst_18 {dimension_numbers = #tpu.dot_dimension_numbers<[1], [0], [0], [1], [0, 0, 1, 1], [], []>} : vector<16x128xbf16>, vector<128x128xbf16>, vector<16x128xf32> -> vector<16x128xf32>
    %26 = vector.broadcast %24 : vector<1x128xf32> to vector<16x128xf32>
    %27 = arith.addf %25, %26 : vector<16x128xf32>
    %cst_19 = arith.constant 0.000000e+00 : f32
    %28 = vector.broadcast %cst_19 : f32 to vector<16x128xf32>
    %29 = arith.cmpf oge, %27, %28 : vector<16x128xf32>
    %cst_20 = arith.constant 0.00999999977 : f32
    %30 = vector.broadcast %cst_20 : f32 to vector<16x128xf32>
    %31 = arith.mulf %30, %27 : vector<16x128xf32>
    %32 = arith.select %29, %27, %31 : vector<16x128xi1>, vector<16x128xf32>
    %c0_21 = arith.constant 0 : index
    %c0_22 = arith.constant 0 : index
    %33 = vector.load %arg8[%c0_21, %c0_22] : memref<16x128xf32, #tpu.memory_space<vmem>>, vector<16x128xf32>
    tpu.vector_store %arg8[%c0_21, %c0_22], %32 {strides = array<i32>} : memref<16x128xf32, #tpu.memory_space<vmem>>, vector<16x128xf32>,
    return
  }
  func.func @transform_0(%arg0: i32) -> (i32, i32) {
    %c0_i32 = arith.constant 0 : i32
    %c0_i32_0 = arith.constant 0 : i32
    return %arg0, %c0_i32 : i32, i32
  }
  func.func @transform_1(%arg0: i32) -> (i32, i32) {
    %c0_i32 = arith.constant 0 : i32
    %c0_i32_0 = arith.constant 0 : i32
    %c0_i32_1 = arith.constant 0 : i32
    return %c0_i32, %c0_i32_0 : i32, i32
  }
  func.func @transform_2(%arg0: i32) -> (i32, i32) {
    %c0_i32 = arith.constant 0 : i32
    %c0_i32_0 = arith.constant 0 : i32
    %c0_i32_1 = arith.constant 0 : i32
    return %c0_i32, %c0_i32_0 : i32, i32
  }
  func.func @transform_3(%arg0: i32) -> (i32, i32) {
    %c0_i32 = arith.constant 0 : i32
    %c0_i32_0 = arith.constant 0 : i32
    %c0_i32_1 = arith.constant 0 : i32
    return %c0_i32, %c0_i32_0 : i32, i32
  }
  func.func @transform_4(%arg0: i32) -> (i32, i32) {
    %c0_i32 = arith.constant 0 : i32
    %c0_i32_0 = arith.constant 0 : i32
    %c0_i32_1 = arith.constant 0 : i32
    return %c0_i32, %c0_i32_0 : i32, i32
  }
  func.func @transform_5(%arg0: i32) -> (i32, i32) {
    %c0_i32 = arith.constant 0 : i32
    %c0_i32_0 = arith.constant 0 : i32
    %c0_i32_1 = arith.constant 0 : i32
    return %c0_i32, %c0_i32_0 : i32, i32
  }
  func.func @transform_6(%arg0: i32) -> (i32, i32) {
    %c0_i32 = arith.constant 0 : i32
    %c0_i32_0 = arith.constant 0 : i32
    %c0_i32_1 = arith.constant 0 : i32
    return %c0_i32, %c0_i32_0 : i32, i32
  }
  func.func @transform_7(%arg0: i32) -> (i32, i32) {
    %c0_i32 = arith.constant 0 : i32
    %c0_i32_0 = arith.constant 0 : i32
    return %arg0, %c0_i32 : i32, i32
  }
}

</mosaic_0001>

<bundles_post_ra>
// kernel: tpu_custom_call.1
= control target key start
LH: loop header
LB: loop body
LE: loop exit
PB: predicated region body
PF: predicated region fallthrough
CT: control target
= control target key end

     0   :  { %12 = vsyncpa [#allocation3], 0  ;;  %s725_s0 = inlined_call_operand.hbm [shape: bf16[16,128], index: 0, kind: input, shape index: {}]   ;;  %s726_s1 = inlined_call_operand.hbm [shape: bf16[128,128], index: 1, kind: input, shape index: {}]   ;;  %s727_s2 = inlined_call_operand.vmem [shape: f32[1,128], index: 2, kind: input, shape index: {}]   ;;  %s728_s3 = inlined_call_operand.hbm [shape: bf16[128,128], index: 3, kind: input, shape index: {}]   ;;  %s729_s4 = inlined_call_operand.vmem [shape: f32[1,128], index: 4, kind: input, shape index: {}]   ;;  %s730_s5 = inlined_call_operand.hbm [shape: bf16[128,128], index: 5, kind: input, shape index: {}]   ;;  %s731_s6 = inlined_call_operand.vmem [shape: f32[1,128], index: 6, kind: input, shape index: {}]   ;;  %s732_s7 = inlined_call_operand.hbm [shape: f32[16,128], index: 7, kind: output, shape index: {}]  }
   0x1   :  { %13 = vsyncpa [#allocation6], 0 }
   0x2   :  { %14 = vsyncpa [#allocation9], 0 }
   0x3   :  { %15 = vsyncpa [#allocation4], 0  ;;  %s33_s26 = sshll.u32 %s726_s1, 4  ;;  %s652_s27 = smov [#allocation5]   ;;  %s34_s26 = int_to_ptr.hbm [resolvable:$true] %s33_s26 }
   0x4   :  { %s35_s28 = sshll.u32 %s652_s27, 4  ;;  %s20_s8 = sshll.u32 %s725_s0, 4  ;;  %s36_s28 = int_to_ptr.vmem [resolvable:$true] %s35_s28  ;;  %s21_s8 = int_to_ptr.hbm [resolvable:$true] %s20_s8 }
   0x5   :  { %s653_s9 = smov 64   ;;  %s654_s10 = smov 4  }
   0x6   :  { %41 = dma.hbm_to_vmem [thread:$0]  %s34_s26, 1024, %s36_s28, [#allocation6], %s653_s9, %s653_s9, %s654_s10  }
   0x7   :  { %s655_s11 = smov [#allocation2]   ;;  %s48_s15 = sshll.u32 %s728_s3, 4  ;;  %s49_s15 = int_to_ptr.hbm [resolvable:$true] %s48_s15 }
   0x8   :  { %s22_s12 = sshll.u32 %s655_s11, 4  ;;  %s63_s17 = sshll.u32 %s730_s5, 4  ;;  %s23_s12 = int_to_ptr.vmem [resolvable:$true] %s22_s12  ;;  %s64_s17 = int_to_ptr.hbm [resolvable:$true] %s63_s17 }
   0x9   :  { %28 = dma.hbm_to_vmem [thread:$0]  %s21_s8, 128, %s23_s12, [#allocation3], %s653_s9, %s653_s9, %s654_s10  }
   0xa   :  { %s656_s18 = smov [#allocation7]   ;;  %s657_s0 = smov [#allocation8]  }
   0xb   :  { %s50_s19 = sshll.u32 %s656_s18, 4  ;;  %s65_s20 = sshll.u32 %s657_s0, 4  ;;  %s51_s19 = int_to_ptr.vmem [resolvable:$true] %s50_s19  ;;  %s66_s20 = int_to_ptr.vmem [resolvable:$true] %s65_s20 }
   0xc   :  { %56 = dma.hbm_to_vmem [thread:$0]  %s49_s15, 1024, %s51_s19, [#allocation6], %s653_s9, %s653_s9, %s654_s10  }
   0xd   :  { %71 = dma.hbm_to_vmem [thread:$0]  %s64_s17, 1024, %s66_s20, [#allocation9], %s653_s9, %s653_s9, %s654_s10  }
   0xe   :  { %644 = dma.done.wait [#allocation3], 128  }
   0xf   :  { %645 = vsyncadd [#allocation3], 4294967168 }
  0x10   :  { %646 = dma.done.wait [#allocation6], 2048  }
  0x11   :  { %647 = vsyncadd [#allocation6], 4294965248 }
  0x12   :  { %648 = dma.done.wait [#allocation9], 1024  }
  0x13   :  { %649 = vsyncadd [#allocation9], 4294966272  ;;  %v495_v0 = vld [vmem:[#allocation5 + $0x38] sm:$0xff]  ;;  %v494_v1 = vld [vmem:[#allocation5 + $0x30] sm:$0xff]  ;;  %s372_s27 = sshll.u32 %s732_s7, 4  ;;  %s660_s28 = smov 8   ;;  %s373_s27 = int_to_ptr.hbm [resolvable:$true] %s372_s27 }
  0x14   :  { %166 = vmatpush.bf16.msra.mxu0 %v495_v0  ;;  %v503_v2 = vld [vmem:[#allocation7 + $0x38] sm:$0xff]  ;;  %v502_v3 = vld [vmem:[#allocation7 + $0x30] sm:$0xff]  ;;  %v493_v4 = vld [vmem:[#allocation5 + $0x28] sm:$0xff] }
  0x15   :  { %255 = vmatpush.bf16.msra.mxu1 %v503_v2  ;;  %v501_v5 = vld [vmem:[#allocation7 + $0x28] sm:$0xff]  ;;  %v492_v6 = vld [vmem:[#allocation5 + $0x20] sm:$0xff]  ;;  %v491_v8 = vld [vmem:[#allocation5 + $0x18] sm:$0xff] }
  0x16   :  { %v500_v7 = vld [vmem:[#allocation7 + $0x20] sm:$0xff]  ;;  %v490_v9 = vld [vmem:[#allocation5 + $0x10] sm:$0xff]  ;;  %v489_v10 = vld [vmem:[#allocation5 + $0x8] sm:$0xff] }
  0x17   :  { %v488_v11 = vld [vmem:[#allocation5] sm:$0xff]  ;;  %v487_v12 = vld [vmem:[#allocation2] sm:$0xff]  ;;  %v498_v14 = vld [vmem:[#allocation7 + $0x10] sm:$0xff] }
  0x18   :  { %167 = vmatpush.bf16.msra.mxu0 %v494_v1  ;;  %v499_v13 = vld [vmem:[#allocation7 + $0x18] sm:$0xff]  ;;  %v497_v15 = vld [vmem:[#allocation7 + $0x8] sm:$0xff]  ;;  %v496_v16 = vld [vmem:[#allocation7] sm:$0xff] }
  0x19   :  { %256 = vmatpush.bf16.msra.mxu1 %v502_v3  ;;  %v511_v17 = vld [vmem:[#allocation8 + $0x38] sm:$0xff]  ;;  %v510_v18 = vld [vmem:[#allocation8 + $0x30] sm:$0xff]  ;;  %v509_v19 = vld [vmem:[#allocation8 + $0x28] sm:$0xff] }
  0x1a   :  { %344 = vmatpush.bf16.msra.mxu2 %v511_v17  ;;  %v508_v20 = vld [vmem:[#allocation8 + $0x20] sm:$0xff]  ;;  %v521_v22 = vld [vmem:[%s727_s2] ss:$0 sm:$0xff]  ;;  %v506_v32 = vld [vmem:[#allocation8 + $0x10] sm:$0xff] }
  0x1b   :  { %v507_v31 = vld [vmem:[#allocation8 + $0x18] sm:$0xff]  ;;  %v505_v33 = vld [vmem:[#allocation8 + $0x8] sm:$0xff]  ;;  %v504_v34 = vld [vmem:[#allocation8] sm:$0xff] }
  0x1c   :  { %168 = vmatpush.bf16.msra.mxu0 %v493_v4  ;;  %v522_v36 = vld [vmem:[%s729_s4] ss:$0 sm:$0xff]  ;;  %s658_s4 = smov [#allocation10]  }
  0x1d   :  { %257 = vmatpush.bf16.msra.mxu1 %v501_v5  ;;  %v523_v45 = vld [vmem:[%s731_s6] ss:$0 sm:$0xff]  ;;  %s370_s24 = sshll.u32 %s658_s4, 4  ;;  %s659_s6 = smov 128   ;;  %s371_s24 = int_to_ptr.vmem [resolvable:$true] %s370_s24 }
  0x1e   :  { %345 = vmatpush.bf16.msra.mxu2 %v510_v18 }
  0x20   :  { %169 = vmatpush.bf16.msra.mxu0 %v492_v6 }
  0x21   :  { %258 = vmatpush.bf16.msra.mxu1 %v500_v7 }
  0x22   :  { %346 = vmatpush.bf16.msra.mxu2 %v509_v19 }
  0x24   :  { %170 = vmatpush.bf16.msra.mxu0 %v491_v8 }
  0x25   :  { %259 = vmatpush.bf16.msra.mxu1 %v499_v13 }
  0x26   :  { %347 = vmatpush.bf16.msra.mxu2 %v508_v20 }
  0x28   :  { %171 = vmatpush.bf16.msra.mxu0 %v490_v9 }
  0x29   :  { %260 = vmatpush.bf16.msra.mxu1 %v498_v14 }
  0x2a   :  { %348 = vmatpush.bf16.msra.mxu2 %v507_v31 }
  0x2c   :  { %172 = vmatpush.bf16.msra.mxu0 %v489_v10 }
  0x2d   :  { %261 = vmatpush.bf16.msra.mxu1 %v497_v15 }
  0x2e   :  { %349 = vmatpush.bf16.msra.mxu2 %v506_v32 }
  0x30   :  { %173 = vmatpush.bf16.msra.mxu0 %v488_v11 }
  0x31   :  { %262 = vmatpush.bf16.msra.mxu1 %v496_v16 }
  0x32   :  { %350 = vmatpush.bf16.msra.mxu2 %v505_v33 }
  0x33   :  { %174 = vmatmul.bf16.vlgmr.msra.gmra.mxu0 %v487_v12 }
  0x36   :  { %351 = vmatpush.bf16.msra.mxu2 %v504_v34 }
  0xb0   :  { %v175_v21 = vpop.f32.mrf.mxu0 }
  0xb1   :  { %v176_v23 = vadd.f32 %v521_v22, %v175_v21 }
  0xb3   :  { %v182_v25 = vmul.f32 0.01, %v176_v23  ;;  %vm180_vm0 = vcmp.ge.f32.partialorder %v176_v23, 0.0 }
  0xb5   :  { %v184_v28 = vsel %vm180_vm0, %v176_v23, %v182_v25 }
  0xb8   :  { %v177_v24 = vpop.f32.mrf.mxu0 }
  0xb9   :  { %v178_v26 = vadd.f32 %v521_v22, %v177_v24 }
  0xbb   :  { %v183_v27 = vmul.f32 0.01, %v178_v26  ;;  %vm181_vm1 = vcmp.ge.f32.partialorder %v178_v26, 0.0 }
  0xbd   :  { %v185_v29 = vsel %vm181_vm1, %v178_v26, %v183_v27 }
  0xbe   :  { %v186_v30 = vpack.c.bf16 %v185_v29, %v184_v28 }
  0xc0   :  { %263 = vmatmul.bf16.vlgmr.msra.gmra.mxu1 %v186_v30 }
 0x13d   :  { %v264_v35 = vpop.f32.mrf.mxu1 }
 0x13e   :  { %v265_v37 = vadd.f32 %v522_v36, %v264_v35 }
 0x140   :  { %v271_v39 = vmul.f32 0.01, %v265_v37  ;;  %vm269_vm2 = vcmp.ge.f32.partialorder %v265_v37, 0.0 }
 0x142   :  { %v273_v42 = vsel %vm269_vm2, %v265_v37, %v271_v39 }
 0x145   :  { %v266_v38 = vpop.f32.mrf.mxu1 }
 0x146   :  { %v267_v40 = vadd.f32 %v522_v36, %v266_v38 }
 0x148   :  { %v272_v41 = vmul.f32 0.01, %v267_v40  ;;  %vm270_vm3 = vcmp.ge.f32.partialorder %v267_v40, 0.0 }
 0x14a   :  { %v274_v43 = vsel %vm270_vm3, %v267_v40, %v272_v41 }
 0x14b   :  { %v275_v44 = vpack.c.bf16 %v274_v43, %v273_v42 }
 0x14d   :  { %352 = vmatmul.bf16.vlgmr.msra.gmra.mxu2 %v275_v44 }
 0x1d0   :  { %v353_v46 = vpop.f32.mrf.mxu2 }
 0x1d1   :  { %v354_v47 = vadd.f32 %v523_v45, %v353_v46 }
 0x1d3   :  { %vm358_vm4 = vcmp.ge.f32.partialorder %v354_v47, 0.0  ;;  %v360_v48 = vmul.f32 0.01, %v354_v47 }
 0x1d5   :  { %v362_v49 = vsel %vm358_vm4, %v354_v47, %v360_v48 }
 0x1d6   :  { %364 = vst [vmem:[#allocation10] sm:$0xff] %v362_v49 }
 0x1d8   :  { %v355_v50 = vpop.f32.mrf.mxu2 }
 0x1d9   :  { %v356_v51 = vadd.f32 %v523_v45, %v355_v50 }
 0x1db   :  { %vm359_vm5 = vcmp.ge.f32.partialorder %v356_v51, 0.0  ;;  %v361_v52 = vmul.f32 0.01, %v356_v51 }
 0x1dd   :  { %v363_v53 = vsel %vm359_vm5, %v356_v51, %v361_v52 }
 0x1de   :  { %365 = vst [vmem:[#allocation10 + $0x8] sm:$0xff] %v363_v53 }
 0x1df   :  { %378 = dma.vmem_to_hbm [thread:$0]  %s371_s24, 256, %s373_s27, [#allocation4], %s659_s6, %s659_s6, %s660_s28  }
 0x1e0   :  { %650 = dma.done.wait [#allocation4], 256  }
 0x1e1   :  { %651 = vsyncadd [#allocation4], 4294967040 }
 0x1e2   :  { %383 = vsyncpa [#allocation3], 1 }
 0x1e3   :  { %384 = vsyncpa [#allocation6], 1 }
 0x1e4   :  { %385 = vsyncpa [#allocation9], 1 }
 0x1e5   :  { %386 = vsyncpa [#allocation4], 1 }

// kernel: tpu_custom_call.1
= control target key start
LH: loop header
LB: loop body
LE: loop exit
PB: predicated region body
PF: predicated region fallthrough
CT: control target
= control target key end

     0   :  { %12 = vsyncpa [#allocation3], 0  ;;  %s725_s0 = inlined_call_operand.hbm [shape: bf16[16,128], index: 0, kind: input, shape index: {}]   ;;  %s726_s1 = inlined_call_operand.hbm [shape: bf16[128,128], index: 1, kind: input, shape index: {}]   ;;  %s727_s2 = inlined_call_operand.vmem [shape: f32[1,128], index: 2, kind: input, shape index: {}]   ;;  %s728_s3 = inlined_call_operand.hbm [shape: bf16[128,128], index: 3, kind: input, shape index: {}]   ;;  %s729_s4 = inlined_call_operand.vmem [shape: f32[1,128], index: 4, kind: input, shape index: {}]   ;;  %s730_s5 = inlined_call_operand.hbm [shape: bf16[128,128], index: 5, kind: input, shape index: {}]   ;;  %s731_s6 = inlined_call_operand.vmem [shape: f32[1,128], index: 6, kind: input, shape index: {}]   ;;  %s732_s7 = inlined_call_operand.hbm [shape: f32[16,128], index: 7, kind: output, shape index: {}]  }
   0x1   :  { %13 = vsyncpa [#allocation6], 0 }
   0x2   :  { %14 = vsyncpa [#allocation9], 0 }
   0x3   :  { %15 = vsyncpa [#allocation4], 0  ;;  %s33_s26 = sshll.u32 %s726_s1, 4  ;;  %s652_s27 = smov [#allocation5]   ;;  %s34_s26 = int_to_ptr.hbm [resolvable:$true] %s33_s26 }
   0x4   :  { %s35_s28 = sshll.u32 %s652_s27, 4  ;;  %s20_s8 = sshll.u32 %s725_s0, 4  ;;  %s36_s28 = int_to_ptr.vmem [resolvable:$true] %s35_s28  ;;  %s21_s8 = int_to_ptr.hbm [resolvable:$true] %s20_s8 }
   0x5   :  { %s653_s9 = smov 64   ;;  %s654_s10 = smov 4  }
   0x6   :  { %41 = dma.hbm_to_vmem [thread:$0]  %s34_s26, 1024, %s36_s28, [#allocation6], %s653_s9, %s653_s9, %s654_s10  }
   0x7   :  { %s655_s11 = smov [#allocation2]   ;;  %s48_s15 = sshll.u32 %s728_s3, 4  ;;  %s49_s15 = int_to_ptr.hbm [resolvable:$true] %s48_s15 }
   0x8   :  { %s22_s12 = sshll.u32 %s655_s11, 4  ;;  %s63_s17 = sshll.u32 %s730_s5, 4  ;;  %s23_s12 = int_to_ptr.vmem [resolvable:$true] %s22_s12  ;;  %s64_s17 = int_to_ptr.hbm [resolvable:$true] %s63_s17 }
   0x9   :  { %28 = dma.hbm_to_vmem [thread:$0]  %s21_s8, 128, %s23_s12, [#allocation3], %s653_s9, %s653_s9, %s654_s10  }
   0xa   :  { %s656_s18 = smov [#allocation7]   ;;  %s657_s0 = smov [#allocation8]  }
   0xb   :  { %s50_s19 = sshll.u32 %s656_s18, 4  ;;  %s65_s20 = sshll.u32 %s657_s0, 4  ;;  %s51_s19 = int_to_ptr.vmem [resolvable:$true] %s50_s19  ;;  %s66_s20 = int_to_ptr.vmem [resolvable:$true] %s65_s20 }
   0xc   :  { %56 = dma.hbm_to_vmem [thread:$0]  %s49_s15, 1024, %s51_s19, [#allocation6], %s653_s9, %s653_s9, %s654_s10  }
   0xd   :  { %71 = dma.hbm_to_vmem [thread:$0]  %s64_s17, 1024, %s66_s20, [#allocation9], %s653_s9, %s653_s9, %s654_s10  }
   0xe   :  { %644 = dma.done.wait [#allocation3], 128  }
   0xf   :  { %645 = vsyncadd [#allocation3], 4294967168 }
  0x10   :  { %646 = dma.done.wait [#allocation6], 2048  }
  0x11   :  { %647 = vsyncadd [#allocation6], 4294965248 }
  0x12   :  { %648 = dma.done.wait [#allocation9], 1024  }
  0x13   :  { %649 = vsyncadd [#allocation9], 4294966272  ;;  %v495_v0 = vld [vmem:[#allocation5 + $0x38] sm:$0xff]  ;;  %v494_v1 = vld [vmem:[#allocation5 + $0x30] sm:$0xff]  ;;  %s372_s27 = sshll.u32 %s732_s7, 4  ;;  %s660_s28 = smov 8   ;;  %s373_s27 = int_to_ptr.hbm [resolvable:$true] %s372_s27 }
  0x14   :  { %166 = vmatpush.bf16.msra.mxu0 %v495_v0  ;;  %v503_v2 = vld [vmem:[#allocation7 + $0x38] sm:$0xff]  ;;  %v502_v3 = vld [vmem:[#allocation7 + $0x30] sm:$0xff]  ;;  %v493_v4 = vld [vmem:[#allocation5 + $0x28] sm:$0xff] }
  0x15   :  { %255 = vmatpush.bf16.msra.mxu1 %v503_v2  ;;  %v501_v5 = vld [vmem:[#allocation7 + $0x28] sm:$0xff]  ;;  %v492_v6 = vld [vmem:[#allocation5 + $0x20] sm:$0xff]  ;;  %v491_v8 = vld [vmem:[#allocation5 + $0x18] sm:$0xff] }
  0x16   :  { %v500_v7 = vld [vmem:[#allocation7 + $0x20] sm:$0xff]  ;;  %v490_v9 = vld [vmem:[#allocation5 + $0x10] sm:$0xff]  ;;  %v489_v10 = vld [vmem:[#allocation5 + $0x8] sm:$0xff] }
  0x17   :  { %v488_v11 = vld [vmem:[#allocation5] sm:$0xff]  ;;  %v487_v12 = vld [vmem:[#allocation2] sm:$0xff]  ;;  %v498_v14 = vld [vmem:[#allocation7 + $0x10] sm:$0xff] }
  0x18   :  { %167 = vmatpush.bf16.msra.mxu0 %v494_v1  ;;  %v499_v13 = vld [vmem:[#allocation7 + $0x18] sm:$0xff]  ;;  %v497_v15 = vld [vmem:[#allocation7 + $0x8] sm:$0xff]  ;;  %v496_v16 = vld [vmem:[#allocation7] sm:$0xff] }
  0x19   :  { %256 = vmatpush.bf16.msra.mxu1 %v502_v3  ;;  %v511_v17 = vld [vmem:[#allocation8 + $0x38] sm:$0xff]  ;;  %v510_v18 = vld [vmem:[#allocation8 + $0x30] sm:$0xff]  ;;  %v509_v19 = vld [vmem:[#allocation8 + $0x28] sm:$0xff] }
  0x1a   :  { %344 = vmatpush.bf16.msra.mxu2 %v511_v17  ;;  %v508_v20 = vld [vmem:[#allocation8 + $0x20] sm:$0xff]  ;;  %v521_v22 = vld [vmem:[%s727_s2] ss:$0 sm:$0xff]  ;;  %v506_v32 = vld [vmem:[#allocation8 + $0x10] sm:$0xff] }
  0x1b   :  { %v507_v31 = vld [vmem:[#allocation8 + $0x18] sm:$0xff]  ;;  %v505_v33 = vld [vmem:[#allocation8 + $0x8] sm:$0xff]  ;;  %v504_v34 = vld [vmem:[#allocation8] sm:$0xff] }
  0x1c   :  { %168 = vmatpush.bf16.msra.mxu0 %v493_v4  ;;  %v522_v36 = vld [vmem:[%s729_s4] ss:$0 sm:$0xff]  ;;  %s658_s4 = smov [#allocation10]  }
  0x1d   :  { %257 = vmatpush.bf16.msra.mxu1 %v501_v5  ;;  %v523_v45 = vld [vmem:[%s731_s6] ss:$0 sm:$0xff]  ;;  %s370_s24 = sshll.u32 %s658_s4, 4  ;;  %s659_s6 = smov 128   ;;  %s371_s24 = int_to_ptr.vmem [resolvable:$true] %s370_s24 }
  0x1e   :  { %345 = vmatpush.bf16.msra.mxu2 %v510_v18 }
  0x20   :  { %169 = vmatpush.bf16.msra.mxu0 %v492_v6 }
  0x21   :  { %258 = vmatpush.bf16.msra.mxu1 %v500_v7 }
  0x22   :  { %346 = vmatpush.bf16.msra.mxu2 %v509_v19 }
  0x24   :  { %170 = vmatpush.bf16.msra.mxu0 %v491_v8 }
  0x25   :  { %259 = vmatpush.bf16.msra.mxu1 %v499_v13 }
  0x26   :  { %347 = vmatpush.bf16.msra.mxu2 %v508_v20 }
  0x28   :  { %171 = vmatpush.bf16.msra.mxu0 %v490_v9 }
  0x29   :  { %260 = vmatpush.bf16.msra.mxu1 %v498_v14 }
  0x2a   :  { %348 = vmatpush.bf16.msra.mxu2 %v507_v31 }
  0x2c   :  { %172 = vmatpush.bf16.msra.mxu0 %v489_v10 }
  0x2d   :  { %261 = vmatpush.bf16.msra.mxu1 %v497_v15 }
  0x2e   :  { %349 = vmatpush.bf16.msra.mxu2 %v506_v32 }
  0x30   :  { %173 = vmatpush.bf16.msra.mxu0 %v488_v11 }
  0x31   :  { %262 = vmatpush.bf16.msra.mxu1 %v496_v16 }
  0x32   :  { %350 = vmatpush.bf16.msra.mxu2 %v505_v33 }
  0x33   :  { %174 = vmatmul.bf16.vlgmr.msra.gmra.mxu0 %v487_v12 }
  0x36   :  { %351 = vmatpush.bf16.msra.mxu2 %v504_v34 }
  0xb0   :  { %v175_v21 = vpop.f32.mrf.mxu0 }
  0xb1   :  { %v176_v23 = vadd.f32 %v521_v22, %v175_v21 }
  0xb3   :  { %v182_v25 = vmul.f32 0.01, %v176_v23  ;;  %vm180_vm0 = vcmp.ge.f32.partialorder %v176_v23, 0.0 }
  0xb5   :  { %v184_v28 = vsel %vm180_vm0, %v176_v23, %v182_v25 }
  0xb8   :  { %v177_v24 = vpop.f32.mrf.mxu0 }
  0xb9   :  { %v178_v26 = vadd.f32 %v521_v22, %v177_v24 }
  0xbb   :  { %v183_v27 = vmul.f32 0.01, %v178_v26  ;;  %vm181_vm1 = vcmp.ge.f32.partialorder %v178_v26, 0.0 }
  0xbd   :  { %v185_v29 = vsel %vm181_vm1, %v178_v26, %v183_v27 }
  0xbe   :  { %v186_v30 = vpack.c.bf16 %v185_v29, %v184_v28 }
  0xc0   :  { %263 = vmatmul.bf16.vlgmr.msra.gmra.mxu1 %v186_v30 }
 0x13d   :  { %v264_v35 = vpop.f32.mrf.mxu1 }
 0x13e   :  { %v265_v37 = vadd.f32 %v522_v36, %v264_v35 }
 0x140   :  { %v271_v39 = vmul.f32 0.01, %v265_v37  ;;  %vm269_vm2 = vcmp.ge.f32.partialorder %v265_v37, 0.0 }
 0x142   :  { %v273_v42 = vsel %vm269_vm2, %v265_v37, %v271_v39 }
 0x145   :  { %v266_v38 = vpop.f32.mrf.mxu1 }
 0x146   :  { %v267_v40 = vadd.f32 %v522_v36, %v266_v38 }
 0x148   :  { %v272_v41 = vmul.f32 0.01, %v267_v40  ;;  %vm270_vm3 = vcmp.ge.f32.partialorder %v267_v40, 0.0 }
 0x14a   :  { %v274_v43 = vsel %vm270_vm3, %v267_v40, %v272_v41 }
 0x14b   :  { %v275_v44 = vpack.c.bf16 %v274_v43, %v273_v42 }
 0x14d   :  { %352 = vmatmul.bf16.vlgmr.msra.gmra.mxu2 %v275_v44 }
 0x1d0   :  { %v353_v46 = vpop.f32.mrf.mxu2 }
 0x1d1   :  { %v354_v47 = vadd.f32 %v523_v45, %v353_v46 }
 0x1d3   :  { %vm358_vm4 = vcmp.ge.f32.partialorder %v354_v47, 0.0  ;;  %v360_v48 = vmul.f32 0.01, %v354_v47 }
 0x1d5   :  { %v362_v49 = vsel %vm358_vm4, %v354_v47, %v360_v48 }
 0x1d6   :  { %364 = vst [vmem:[#allocation10] sm:$0xff] %v362_v49 }
 0x1d8   :  { %v355_v50 = vpop.f32.mrf.mxu2 }
 0x1d9   :  { %v356_v51 = vadd.f32 %v523_v45, %v355_v50 }
 0x1db   :  { %vm359_vm5 = vcmp.ge.f32.partialorder %v356_v51, 0.0  ;;  %v361_v52 = vmul.f32 0.01, %v356_v51 }
 0x1dd   :  { %v363_v53 = vsel %vm359_vm5, %v356_v51, %v361_v52 }
 0x1de   :  { %365 = vst [vmem:[#allocation10 + $0x8] sm:$0xff] %v363_v53 }
 0x1df   :  { %378 = dma.vmem_to_hbm [thread:$0]  %s371_s24, 256, %s373_s27, [#allocation4], %s659_s6, %s659_s6, %s660_s28  }
 0x1e0   :  { %650 = dma.done.wait [#allocation4], 256  }
 0x1e1   :  { %651 = vsyncadd [#allocation4], 4294967040 }
 0x1e2   :  { %383 = vsyncpa [#allocation3], 1 }
 0x1e3   :  { %384 = vsyncpa [#allocation6], 1 }
 0x1e4   :  { %385 = vsyncpa [#allocation9], 1 }
 0x1e5   :  { %386 = vsyncpa [#allocation4], 1 }

</bundles_post_ra>
